<compile_context>
chip_gen: v6e
topology: v6e:2x2x1
jax: 0.10.0
libtpu: 0.0.40
codegen_flags: <defaults>
</compile_context>

<pallas_src>
import numpy as np
import jax
import jax.numpy as jnp
from jax.experimental import pallas as pl
from jax.experimental.pallas import tpu as pltpu

N_QUBITS = 4
DIM = 2 ** N_QUBITS          # 16
BLOCK_B_MAX = 4096           # lane-major block; a few [16, 4096] f32 tiles << VMEM on v5e/v6e/v7x


# ---------------------------------------------------------------------------
# Pallas kernel: expectation = t^T C t per batch column, lane-major layout.
# ---------------------------------------------------------------------------
def _quantum_kernel(x_ref, c_ref, bits_ref, out_ref):
    x = x_ref[...]                       # [4, BB]  rotation angles (f32)
    half = 0.5 * x
    c = jnp.cos(half)                    # [4, BB]
    s = jnp.sin(half)                    # [4, BB]
    smc = s - c                          # [4, BB]

    bits = bits_ref[...]                 # [16, 4]  bit_q(idx) in {0.0, 1.0}

    # t[idx, b] = prod_q (c[q,b] if bit_q(idx)==0 else s[q,b])
    # blend: c + bit*(s-c)  (pure f32 arithmetic, broadcasts [16,1]x[1,BB])
    t = None
    for q in range(N_QUBITS):
        fac = c[q:q + 1, :] + bits[:, q:q + 1] * smc[q:q + 1, :]   # [16, BB]
        t = fac if t is None else t * fac

    # expectation_b = sum_i t[i,b] * (C @ t)[i,b]
    u = jnp.dot(c_ref[...], t,
                preferred_element_type=jnp.float32,
                precision=jax.lax.Precision.HIGHEST)               # [16, BB]
    out_ref[...] = jnp.sum(t * u, axis=0, keepdims=True)           # [1, BB]


# ---------------------------------------------------------------------------
# Host-side parameter setup: build the real symmetric quadratic form C.
# ---------------------------------------------------------------------------
def _rx(theta):
    c, s = np.cos(theta / 2.0), np.sin(theta / 2.0)
    return np.array([[c, -1j * s], [-1j * s, c]], dtype=np.complex128)


def _rz(theta):
    return np.array([[np.exp(-1j * theta / 2.0), 0.0],
                     [0.0, np.exp(1j * theta / 2.0)]], dtype=np.complex128)


def _kron_all(gates):
    m = np.array([[1.0 + 0.0j]])
    for g in gates:                      # wire 0 first => wire 0 is the MSB
        m = np.kron(m, g)
    return m


def _cnot(control, target):
    p = np.zeros((DIM, DIM), dtype=np.complex128)
    for idx in range(DIM):
        bits = [(idx >> (N_QUBITS - 1 - q)) & 1 for q in range(N_QUBITS)]
        if bits[control]:
            bits[target] ^= 1
        new = 0
        for q, bq in enumerate(bits):
            new |= bq << (N_QUBITS - 1 - q)
        p[new, idx] = 1.0
    return p


def _build_c_matrix(weights):
    """C = Re(D^H M^H Z0 M D): 16x16 real symmetric, so <Z0> = t^T C t."""
    w = np.asarray(weights, np.float64)
    rz_layer = _kron_all([_rz(w[q]) for q in range(N_QUBITS)])
    rx_layer = _kron_all([_rx(w[N_QUBITS + q]) for q in range(N_QUBITS)])
    m = rz_layer
    for q in range(N_QUBITS - 1):
        m = _cnot(q, q + 1) @ m
    m = rx_layer @ m
    z0 = np.array([1.0 - 2.0 * ((idx >> (N_QUBITS - 1)) & 1) for idx in range(DIM)],
                  np.float64)
    a = m.conj().T @ np.diag(z0) @ m                     # Hermitian observable
    phases = np.array([(-1j) ** bin(idx).count("1") for idx in range(DIM)],
                      np.complex128)
    d = np.diag(phases)
    c = (d.conj().T @ a @ d).real                        # imaginary part is antisymmetric
    return jnp.asarray(c, jnp.float32)


def _bits_matrix():
    b = np.zeros((DIM, N_QUBITS), np.float32)
    for idx in range(DIM):
        for q in range(N_QUBITS):
            b[idx, q] = (idx >> (N_QUBITS - 1 - q)) & 1
    return jnp.asarray(b)


def _round_up(n, m):
    return ((n + m - 1) // m) * m


# ---------------------------------------------------------------------------
# Wrapper
# ---------------------------------------------------------------------------
def quantum_layer_forward(x, weights):
    x = jnp.asarray(x, jnp.float32)[:, :N_QUBITS]        # [B, 4]
    b = x.shape[0]
    c_mat = _build_c_matrix(weights)                     # [16, 16] f32
    bits = _bits_matrix()                                # [16, 4]  f32

    block_b = min(BLOCK_B_MAX, _round_up(max(b, 1), 128))
    bp = _round_up(b, block_b)
    grid = bp // block_b

    # lane-major: batch on the last (lane) axis, zero-padded to bp
    xt = jnp.zeros((N_QUBITS, bp), jnp.float32).at[:, :b].set(x.T)

    out = pl.pallas_call(
        _quantum_kernel,
        out_shape=jax.ShapeDtypeStruct((1, bp), jnp.float32),
        grid=(grid,),
        in_specs=[
            pl.BlockSpec((N_QUBITS, block_b), lambda i: (0, i)),
            pl.BlockSpec((DIM, DIM), lambda i: (0, 0)),
            pl.BlockSpec((DIM, N_QUBITS), lambda i: (0, 0)),
        ],
        out_specs=pl.BlockSpec((1, block_b), lambda i: (0, i)),
        compiler_params=pltpu.CompilerParams(
            dimension_semantics=("parallel",)),
    )(xt, c_mat, bits)
    return out[0, :b]                                    # [B], like torch.stack(logits)


# ---------------------------------------------------------------------------
# Independent numpy reference (gate-by-gate statevector simulation)
# ---------------------------------------------------------------------------
def _reference(x, weights):
    x = np.asarray(x, np.float64)
    w = np.asarray(weights, np.float64)
    cnot4 = np.array([[1, 0, 0, 0], [0, 1, 0, 0],
                      [0, 0, 0, 1], [0, 0, 1, 0]], dtype=np.complex128)

    def apply1(state, gate, wire):
        st = state.reshape([2] * N_QUBITS)
        st = np.moveaxis(st, wire, 0).reshape(2, -1)
        st = gate @ st
        return np.moveaxis(st.reshape([2] * N_QUBITS), 0, wire).reshape(DIM)

    outs = []
    for xs in x:
        state = np.zeros(DIM, dtype=np.complex128)
        state[0] = 1.0
        for q in range(N_QUBITS):
            state = apply1(state, _rx(xs[q]), q)
        for q in range(N_QUBITS):
            state = apply1(state, _rz(w[q]), q)
        for q in range(N_QUBITS - 1):
            st = state.reshape([2] * N_QUBITS)
            st = np.moveaxis(st, (q, q + 1), (0, 1)).reshape(4, -1)
            st = cnot4 @ st
            state = np.moveaxis(st.reshape([2] * N_QUBITS), (0, 1), (q, q + 1)).reshape(DIM)
        for q in range(N_QUBITS):
            state = apply1(state, _rx(w[N_QUBITS + q]), q)
        z0 = np.array([1.0 - 2.0 * ((idx >> (N_QUBITS - 1)) & 1) for idx in range(DIM)])
        outs.append(float(np.sum(np.abs(state) ** 2 * z0)))
    return np.array(outs, np.float32)


if __name__ == "__main__":
    key = jax.random.PRNGKey(0)
    kx, kw = jax.random.split(key)
    batch = 8
    x = jax.random.normal(kx, (batch, N_QUBITS), dtype=jnp.float32)
    # deterministic parameter init, mirroring 0.01 * randn(2 * n_qubits)
    weights = 0.01 * jax.random.normal(kw, (2 * N_QUBITS,), dtype=jnp.float32)

    out = jax.block_until_ready(quantum_layer_forward(x, weights))

    ref = _reference(np.asarray(x), np.asarray(weights))
    if not np.allclose(np.asarray(out), ref, atol=2e-3, rtol=2e-3):
        raise SystemExit(f"mismatch:\nkernel={np.asarray(out)}\nref   ={ref}")
    print("KERNEL_OK")
</pallas_src>

<mosaic_0001>
module attributes {stable_mosaic.version = 11 : i64} {
  func.func @_quantum_kernel(%arg0: i32, %arg1: memref<4x128xf32, #tpu.memory_space<vmem>>, %arg2: memref<16x16xf32, #tpu.memory_space<vmem>>, %arg3: memref<16x4xf32, #tpu.memory_space<vmem>>, %arg4: memref<1x128xf32, #tpu.memory_space<vmem>>) attributes {dimension_semantics = [#tpu.dimension_semantics<parallel>], iteration_bounds = array<i64: 1>, scalar_prefetch = 0 : i64, scratch_operands = 0 : i64, tpu.core_type = #tpu.core_type<tc>, window_params = [{transform_indices = @transform_0, window_bounds = array<i64: 4, 128>}, {pipeline_mode = #tpu.pipeline_mode<synchronous>, transform_indices = @transform_1, window_bounds = array<i64: 16, 16>}, {pipeline_mode = #tpu.pipeline_mode<synchronous>, transform_indices = @transform_2, window_bounds = array<i64: 16, 4>}, {transform_indices = @transform_3, window_bounds = array<i64: 1, 128>}]} {
    %c0 = arith.constant 0 : index
    %c0_0 = arith.constant 0 : index
    %0 = vector.load %arg1[%c0, %c0_0] : memref<4x128xf32, #tpu.memory_space<vmem>>, vector<4x128xf32>
    %cst = arith.constant 5.000000e-01 : f32
    %1 = vector.broadcast %cst : f32 to vector<4x128xf32>
    %2 = arith.mulf %1, %0 : vector<4x128xf32>
    %3 = math.cos %2 : vector<4x128xf32>
    %4 = math.sin %2 : vector<4x128xf32>
    %5 = arith.subf %4, %3 : vector<4x128xf32>
    %c0_1 = arith.constant 0 : index
    %c0_2 = arith.constant 0 : index
    %6 = vector.load %arg3[%c0_1, %c0_2] : memref<16x4xf32, #tpu.memory_space<vmem>>, vector<16x4xf32>
    %7 = vector.extract_strided_slice %3 {offsets = [0, 0], sizes = [1, 128], strides = [1, 1]} : vector<4x128xf32> to vector<1x128xf32>
    %8 = vector.extract_strided_slice %6 {offsets = [0, 0], sizes = [16, 1], strides = [1, 1]} : vector<16x4xf32> to vector<16x1xf32>
    %9 = vector.extract_strided_slice %5 {offsets = [0, 0], sizes = [1, 128], strides = [1, 1]} : vector<4x128xf32> to vector<1x128xf32>
    %10 = vector.broadcast %8 : vector<16x1xf32> to vector<16x128xf32>
    %11 = vector.broadcast %9 : vector<1x128xf32> to vector<16x128xf32>
    %12 = arith.mulf %10, %11 : vector<16x128xf32>
    %13 = vector.broadcast %7 : vector<1x128xf32> to vector<16x128xf32>
    %14 = arith.addf %13, %12 : vector<16x128xf32>
    %15 = vector.extract_strided_slice %3 {offsets = [1, 0], sizes = [1, 128], strides = [1, 1]} : vector<4x128xf32> to vector<1x128xf32>
    %16 = vector.extract_strided_slice %6 {offsets = [0, 1], sizes = [16, 1], strides = [1, 1]} : vector<16x4xf32> to vector<16x1xf32>
    %17 = vector.extract_strided_slice %5 {offsets = [1, 0], sizes = [1, 128], strides = [1, 1]} : vector<4x128xf32> to vector<1x128xf32>
    %18 = vector.broadcast %16 : vector<16x1xf32> to vector<16x128xf32>
    %19 = vector.broadcast %17 : vector<1x128xf32> to vector<16x128xf32>
    %20 = arith.mulf %18, %19 : vector<16x128xf32>
    %21 = vector.broadcast %15 : vector<1x128xf32> to vector<16x128xf32>
    %22 = arith.addf %21, %20 : vector<16x128xf32>
    %23 = arith.mulf %14, %22 : vector<16x128xf32>
    %24 = vector.extract_strided_slice %3 {offsets = [2, 0], sizes = [1, 128], strides = [1, 1]} : vector<4x128xf32> to vector<1x128xf32>
    %25 = vector.extract_strided_slice %6 {offsets = [0, 2], sizes = [16, 1], strides = [1, 1]} : vector<16x4xf32> to vector<16x1xf32>
    %26 = vector.extract_strided_slice %5 {offsets = [2, 0], sizes = [1, 128], strides = [1, 1]} : vector<4x128xf32> to vector<1x128xf32>
    %27 = vector.broadcast %25 : vector<16x1xf32> to vector<16x128xf32>
    %28 = vector.broadcast %26 : vector<1x128xf32> to vector<16x128xf32>
    %29 = arith.mulf %27, %28 : vector<16x128xf32>
    %30 = vector.broadcast %24 : vector<1x128xf32> to vector<16x128xf32>
    %31 = arith.addf %30, %29 : vector<16x128xf32>
    %32 = arith.mulf %23, %31 : vector<16x128xf32>
    %33 = vector.extract_strided_slice %3 {offsets = [3, 0], sizes = [1, 128], strides = [1, 1]} : vector<4x128xf32> to vector<1x128xf32>
    %34 = vector.extract_strided_slice %6 {offsets = [0, 3], sizes = [16, 1], strides = [1, 1]} : vector<16x4xf32> to vector<16x1xf32>
    %35 = vector.extract_strided_slice %5 {offsets = [3, 0], sizes = [1, 128], strides = [1, 1]} : vector<4x128xf32> to vector<1x128xf32>
    %36 = vector.broadcast %34 : vector<16x1xf32> to vector<16x128xf32>
    %37 = vector.broadcast %35 : vector<1x128xf32> to vector<16x128xf32>
    %38 = arith.mulf %36, %37 : vector<16x128xf32>
    %39 = vector.broadcast %33 : vector<1x128xf32> to vector<16x128xf32>
    %40 = arith.addf %39, %38 : vector<16x128xf32>
    %41 = arith.mulf %32, %40 : vector<16x128xf32>
    %c0_3 = arith.constant 0 : index
    %c0_4 = arith.constant 0 : index
    %42 = vector.load %arg2[%c0_3, %c0_4] : memref<16x16xf32, #tpu.memory_space<vmem>>, vector<16x16xf32>
    %cst_5 = arith.constant dense<0.000000e+00> : vector<16x128xf32>
    %43 = tpu.matmul %42, %41, %cst_5 {dimension_numbers = #tpu.dot_dimension_numbers<[1], [0], [0], [1], [0, 0, 1, 1], [], []>, precision = #tpu.contract_precision<fp32>} : vector<16x16xf32>, vector<16x128xf32>, vector<16x128xf32> -> vector<16x128xf32>
    %44 = arith.mulf %41, %43 : vector<16x128xf32>
    %cst_6 = arith.constant dense<0.000000e+00> : vector<128xf32>
    %45 = vector.multi_reduction <add>, %44, %cst_6 [0] : vector<16x128xf32> to vector<128xf32>
    %46 = vector.shape_cast %45 : vector<128xf32> to vector<1x128xf32>
    %c0_7 = arith.constant 0 : index
    %c0_8 = arith.constant 0 : index
    %47 = vector.load %arg4[%c0_7, %c0_8] : memref<1x128xf32, #tpu.memory_space<vmem>>, vector<1x128xf32>
    tpu.vector_store %arg4[%c0_7, %c0_8], %46 {strides = array<i32>} : memref<1x128xf32, #tpu.memory_space<vmem>>, vector<1x128xf32>,
    return
  }
  func.func @transform_0(%arg0: i32) -> (i32, i32) {
    %c0_i32 = arith.constant 0 : i32
    %c0_i32_0 = arith.constant 0 : i32
    return %c0_i32, %arg0 : i32, i32
  }
  func.func @transform_1(%arg0: i32) -> (i32, i32) {
    %c0_i32 = arith.constant 0 : i32
    %c0_i32_0 = arith.constant 0 : i32
    %c0_i32_1 = arith.constant 0 : i32
    return %c0_i32, %c0_i32_0 : i32, i32
  }
  func.func @transform_2(%arg0: i32) -> (i32, i32) {
    %c0_i32 = arith.constant 0 : i32
    %c0_i32_0 = arith.constant 0 : i32
    %c0_i32_1 = arith.constant 0 : i32
    return %c0_i32, %c0_i32_0 : i32, i32
  }
  func.func @transform_3(%arg0: i32) -> (i32, i32) {
    %c0_i32 = arith.constant 0 : i32
    %c0_i32_0 = arith.constant 0 : i32
    return %c0_i32, %arg0 : i32, i32
  }
}

</mosaic_0001>

<bundles_post_ra>
// kernel: tpu_custom_call.1
= control target key start
LH: loop header
LB: loop body
LE: loop exit
PB: predicated region body
PF: predicated region fallthrough
CT: control target
= control target key end

     0   :  { %v973_v2 = vmov 0   ;;  %s1090_s0 = inlined_call_operand.vmem [shape: f32[4,128], index: 0, kind: input, shape index: {}]   ;;  %s1091_s1 = inlined_call_operand.vmem [shape: f32[16,16], index: 1, kind: input, shape index: {}]   ;;  %s1092_s2 = inlined_call_operand.vmem [shape: f32[16,4], index: 2, kind: input, shape index: {}]   ;;  %s1093_s3 = inlined_call_operand.hbm [shape: f32[1,128], index: 3, kind: output, shape index: {}]  }
   0x1   :  { %v226_v0 = vld [vmem:[%s1092_s2 + $0x8] sm:$0xff]  ;;  %v225_v1 = vld [vmem:[%s1092_s2] sm:$0xff]  ;;  %941 = vset.pattern.permute.xlu1 %v973_v2  ;;  %939 = vset.pattern.permute.xlu0 %v973_v2 }
   0x2   :  { %v15_v3 = vld [vmem:[%s1090_s0] sm:$0xf]  ;;  %234 = vperm.xlu0 %939, %v226_v0   ;;  %229 = vperm.xlu1 %941, %v225_v1  }
   0x3   :  { %v1013_v4 = vmul.f32 0.5, %v15_v3 }
   0x5   :  { %v17_v5 = vand.u32 2147483647, %v1013_v4  ;;  %v20_v6 = vand.u32 2139095040, %v1013_v4 }
   0x6   :  { %8 = vsyncpa [#allocation3], 0  ;;  %v974_v7 = vmov 1   ;;  %v975_v12 = vmov 2   ;;  %v976_v18 = vmov 3   ;;  %v315_v30 = vld [vmem:[%s1091_s1] sm:$0xff] }
   0x7   :  { %940 = vset.pattern.permute.xlu0 %v974_v7  ;;  %942 = vset.pattern.permute.xlu1 %v974_v7  ;;  %v21_v8 = vshrl.u32 %v20_v6, 23  ;;  %v24_v9 = vand.u32 8388607, %v17_v5  ;;  %v977_v20 = vmov 683565275   ;;  %vm317_vm2 = vcmask 130048  }
   0x8   :  { %254 = vperm.xlu0 %940, %v226_v0   ;;  %250 = vperm.xlu1 %942, %v225_v1   ;;  %v978_v22 = vmov 2475754826   ;;  %v979_v24 = vmov 2131351028   ;;  %v980_v26 = vmov 2102212464  }
   0x9   :  { %v850_v10 = vadd.s32 4294967169, %v21_v8  ;;  %v25_v13 = vor.u32 8388608, %v24_v9  ;;  %v981_v28 = vmov 920167782   ;;  %v982_v36 = vmov 1326507024  }
   0xa   :  { %v319_v41 = vsel %vm317_vm2, %v315_v30, 0  ;;  %vm19_vm8 = vcmp.lt.s32.totalorder %v1013_v4, 0  ;;  %vm18_vm9 = vcmp.le.f32.partialorder %v17_v5, 0.7853982 }
   0xb   :  { %v27_v11 = vadd.s32 1, %v850_v10  ;;  %v1019_v17 = vshll.u32 %v25_v13, 8  ;;  %v1025_v44 = vand.u32 4294901760, %v319_v41 }
   0xc   :  { %944 = vset.pattern.permute.xlu0 %v975_v12  ;;  %943 = vset.pattern.permute.xlu1 %v975_v12 }
   0xd   :  { %272 = vperm.xlu0 %944, %v225_v1   ;;  %276 = vperm.xlu1 %943, %v226_v0   ;;  %vm28_vm0 = vcmp.gt.s32.totalorder %v27_v11, 0  ;;  %v1034_v52 = vsub.f32 %v319_v41, %v1025_v44 }
   0xe   :  { %v29_v14 = vsel %vm28_vm0, %v27_v11, 0  ;;  %893 = vmatprep.mubr.f32.mxu1 %v1025_v44  ;;  %vm109_vm0 = vweird.f32 %v1013_v4 }
   0xf   :  { %v30_v15 = vshrl.u32 %v29_v14, 5  ;;  %v31_v16 = vand.u32 31, %v29_v14  ;;  %v393_v58 = vand.u32 4294901760, %v1034_v52 }
  0x11   :  { %945 = vset.pattern.permute.xlu1 %v976_v18  ;;  %v32_v19 = vsub.s32 32, %v31_v16  ;;  %v34_v21 = vshll.u32 %v977_v20, %v31_v16  ;;  %v37_v23 = vshll.u32 %v978_v22, %v31_v16  ;;  %v40_v25 = vshll.u32 %v979_v24, %v31_v16  ;;  %946 = vset.pattern.permute.xlu0 %v976_v18 }
  0x12   :  { %298 = vperm.xlu1 %945, %v226_v0   ;;  %v43_v27 = vshll.u32 %v980_v26, %v31_v16  ;;  %v46_v29 = vshll.u32 %v981_v28, %v31_v16  ;;  %vm49_vm1 = vcmp.lt.s32.totalorder %v30_v15, 1  ;;  %vm50_vm3 = vcmp.lt.s32.totalorder %v30_v15, 2 }
  0x13   :  { %v33_v31 = vshrl.u32 %v977_v20, %v32_v19  ;;  %v35_v32 = vshrl.u32 %v978_v22, %v32_v19  ;;  %v38_v33 = vshrl.u32 %v979_v24, %v32_v19  ;;  %v41_v34 = vshrl.u32 %v980_v26, %v32_v19 }
  0x14   :  { %v44_v35 = vshrl.u32 %v981_v28, %v32_v19  ;;  %v47_v37 = vshrl.u32 %v982_v36, %v32_v19  ;;  %vm52_vm4 = vcmp.lt.s32.totalorder %v30_v15, 4  ;;  %vm51_vm5 = vcmp.lt.s32.totalorder %v30_v15, 3 }
  0x15   :  { %v36_v38 = vor.u32 %v35_v32, %v34_v21  ;;  %v39_v39 = vor.u32 %v38_v33, %v37_v23  ;;  %v42_v40 = vor.u32 %v41_v34, %v40_v25  ;;  %v394_v63 = vsub.f32 %v1034_v52, %v393_v58 }
  0x16   :  { %294 = vperm.xlu1 %945, %v225_v1   ;;  %v45_v42 = vor.u32 %v44_v35, %v43_v27  ;;  %v48_v43 = vor.u32 %v47_v37, %v46_v29 }
  0x17   :  { %v53_v45 = vsel %vm49_vm1, %v33_v31, %v36_v38  ;;  %v54_v46 = vsel %vm52_vm4, %v42_v40, 2102212464  ;;  %v57_v47 = vsel %vm49_vm1, %v36_v38, %v39_v39  ;;  %v61_v48 = vsel %vm49_vm1, %v39_v39, %v42_v40 }
  0x18   :  { %v55_v49 = vsel %vm51_vm5, %v39_v39, %v54_v46  ;;  %v58_v50 = vsel %vm52_vm4, %v45_v42, 920167782  ;;  %v62_v51 = vsel %vm52_vm4, %v48_v43, 1326507024  ;;  %v395_v1 = vand.u32 4294901760, %v394_v63 }
  0x19   :  { %v59_v53 = vsel %vm51_vm5, %v42_v40, %v58_v50  ;;  %v63_v54 = vsel %vm51_vm5, %v45_v42, %v62_v51  ;;  %v56_v55 = vsel %vm50_vm3, %v53_v45, %v55_v49  ;;  %v237_v45 = vlaneseq }
  0x1a   :  { %v60_v56 = vsel %vm50_vm3, %v57_v47, %v59_v53  ;;  %v64_v57 = vsel %vm50_vm3, %v61_v48, %v63_v54  ;;  %v72_v0 = vmul.u32 %v1019_v17, %v56_v55  ;;  %886 = vmatprep.mubr.f32.mxu0 %v395_v1 }
  0x1b   :  { %v1042_v59 = vmul.u32.u64.low %v1019_v17, %v64_v57  ;;  %v1043_v60 = vmul.u32.u64.high %v1019_v17, %v64_v57, %v1042_v59  ;;  %v1046_v61 = vmul.u32.u64.low %v1019_v17, %v60_v56  ;;  %v1047_v62 = vmul.u32.u64.high %v1019_v17, %v60_v56, %v1046_v61 }
  0x1c   :  { %v238_v48 = vshrl.u32 %v237_v45, 7  ;;  %v316_v59 = vld [vmem:[%s1091_s1 + $0x8] sm:$0xff]  ;;  %s983_s1 = smov [#allocation2]  }
  0x1d   :  { %vm74_vm6 = vc.u32 %v1043_v60, %v1046_v61  ;;  %v75_v2 = vadd.s32 1, %v1047_v62  ;;  %v73_v17 = vadd.s32 %v1046_v61, %v1043_v60  ;;  %v322_v1 = vsel %vm317_vm2, %v316_v59, 0  ;;  %s842_s20 = sshll.u32 %s983_s1, 4  ;;  %s843_s20 = int_to_ptr.vmem [resolvable:$true] %s842_s20 }
  0x1e   :  { %v239_v51 = vsub.s32 0, %v238_v48  ;;  %v259_v56 = vsub.s32 1, %v238_v48  ;;  %v281_v57 = vsub.s32 2, %v238_v48  ;;  %s951_s21 = scalar_lea.vmem %s843_s20, 16  ;;  %s955_s22 = scalar_lea.vmem %s843_s20, 32 }
  0x1f   :  { %v76_v3 = vsel %vm74_vm6, %v75_v2, %v1047_v62  ;;  %p952_p0 = scmp.ne.s32.totalorder %s843_s20, %s951_s21  ;;  %p956_p1 = scmp.lt.s32.totalorder %s843_s20, %s843_s20 }
  0x20   :  { %v77_v6 = vadd.s32 %v76_v3, %v72_v0  ;;  %p957_p2 = scmp.lt.s32.totalorder %s955_s22, %s951_s21 }
  0x22   :  { %v78_v7 = vadd.s32 536870912, %v77_v6  ;;  %p958_p3 = por %p957_p2, %p956_p1 }
  0x24   :  { %v79_v8 = vshrl.u32 %v78_v7, 30  ;;  %v303_v7 = vsub.s32 3, %v238_v48  ;;  %p959_p4 = pnand %p958_p3, %p952_p0 }
  0x26   :  { %v80_v9 = vshll.u32 %v79_v8, 30  ;;  %v103_v31 = vsub.s32 4, %v79_v8 }
  0x28   :  { %v81_v10 = vsub.s32 %v77_v6, %v80_v9  ;;  %v104_v32 = vsel %vm19_vm8, %v103_v31, %v79_v8  ;;  %v1066_v8 = vand.u32 4294901760, %v322_v1 }
  0x29   :  { %v106_v33 = vsel %vm18_vm9, 0, %v104_v32 }
  0x2a   :  { %v83_v11 = vsub.s32 0, %v81_v10  ;;  %v213_v34 = vadd.s32 3, %v106_v33  ;;  %v110_v37 = vand.u32 3, %v106_v33 }
  0x2c   :  { %v851_v12 = vmin.u32 %v83_v11, %v81_v10  ;;  %v214_v38 = vand.u32 3, %v213_v34  ;;  %vm112_vm10 = vcmp.eq.s32.totalorder %v110_v37, 0  ;;  %vm115_vm11 = vcmp.eq.s32.totalorder %v110_v37, 2 }
  0x2d   :  { %vm111_vm14 = vcmp.lt.s32.totalorder %v110_v37, 2 }
  0x2e   :  { %v85_v13 = vclz %v851_v12  ;;  %vm216_vm12 = vcmp.eq.s32.totalorder %v214_v38, 0  ;;  %vm219_vm13 = vcmp.eq.s32.totalorder %v214_v38, 2  ;;  %vm215_vm15 = vcmp.lt.s32.totalorder %v214_v38, 2 }
  0x30   :  { %v852_v14 = vadd.s32 4294967294, %v85_v13 }
  0x32   :  { %vm853_vm7 = vcmp.lt.s32.totalorder %v852_v14, 0 }
  0x33   :  { %v88_v15 = vsel %vm853_vm7, 0, %v852_v14 }
  0x34   :  { %v93_v16 = vsub.s32 4294967266, %v88_v15  ;;  %v89_v18 = vsub.s32 32, %v88_v15  ;;  %v90_v20 = vshll.u32 %v81_v10, %v88_v15 }
  0x36   :  { %v94_v19 = vadd.s32 127, %v93_v16  ;;  %v91_v21 = vshrl.u32 %v73_v17, %v89_v18  ;;  %v402_v18 = vsub.f32 %v322_v1, %v1066_v8 }
  0x38   :  { %v95_v22 = vshll.u32 %v94_v19, 23  ;;  %v92_v23 = vor.u32 %v91_v21, %v90_v20 }
  0x3a   :  { %v96_v24 = vor.u32 4788187, %v95_v22  ;;  %v99_v26 = vcvt.s32.f32 %v92_v23 }
  0x3c   :  { %v97_v25 = vand.u32 2147483647, %v96_v24 }
  0x3e   :  { %v100_v27 = vmul.f32 %v99_v26, %v97_v25  ;;  %v403_v26 = vand.u32 4294901760, %v402_v18 }
  0x40   :  { %v101_v28 = vxor.u32 2147483648, %v100_v27  ;;  %v404_v38 = vsub.f32 %v402_v18, %v403_v26 }
  0x42   :  { %v102_v29 = vsel %vm19_vm8, %v101_v28, %v100_v27 }
  0x43   :  { %v105_v30 = vsel %vm18_vm9, %v1013_v4, %v102_v29 }
  0x44   :  { %947 = vcosq.f32 %v105_v30 }
  0x45   :  { %949 = vsinq.f32 %v105_v30 }
  0x51   :  { %v948_v35 = vpop.eup %947 }
  0x52   :  { %v950_v36 = vpop.eup %949  ;;  %v116_v40 = vxor.u32 2147483648, %v948_v35 }
  0x53   :  { %v113_v39 = vxor.u32 2147483648, %v950_v36 }
  0x54   :  { %v117_v41 = vsel %vm115_vm11, %v116_v40, %v950_v36  ;;  %v221_v43 = vsel %vm219_vm13, %v116_v40, %v950_v36 }
  0x55   :  { %v114_v5 = vsel %vm112_vm10, %v948_v35, %v113_v39  ;;  %v218_v42 = vsel %vm216_vm12, %v948_v35, %v113_v39 }
  0x56   :  { %v118_v46 = vsel %vm111_vm14, %v114_v5, %v117_v41  ;;  %v222_v47 = vsel %vm215_vm15, %v218_v42, %v221_v43  ;;  %v405_v41 = vand.u32 4294901760, %v404_v38 }
  0x57   :  { %v119_v49 = vsel %vm109_vm0, nan, %v118_v46  ;;  %v223_v50 = vsel %vm109_vm0, nan, %v222_v47 }
  0x58   :  { %v224_v54 = vsub.f32 %v223_v50, %v119_v49  ;;  %v246_v3 = vrot.slane %v119_v49, %v239_v51  ;;  %v266_v6 = vrot.slane %v119_v49, %v259_v56  ;;  %v288_v11 = vrot.slane %v119_v49, %v281_v57 }
  0x59   :  { %v310_v17 = vrot.slane %v119_v49, %v303_v7 }
  0x5a   :  { %v240_v60 = vrot.slane %v224_v54, %v239_v51  ;;  %v260_v61 = vrot.slane %v224_v54, %v259_v56  ;;  %v282_v2 = vrot.slane %v224_v54, %v281_v57  ;;  %v304_v16 = vrot.slane %v224_v54, %v303_v7 }
  0x7d   :  { %v230_v53 = vpop.permute.xlu1 %229  ;;  %v235_v55 = vpop.permute.xlu0 %234 }
  0x7e   :  { %v242_v4 = vmul.f32 %v240_v60, %v235_v55  ;;  %v241_v19 = vmul.f32 %v240_v60, %v230_v53 }
  0x80   :  { %v248_v9 = vadd.f32 %v246_v3, %v242_v4  ;;  %v247_v27 = vadd.f32 %v246_v3, %v241_v19 }
  0x83   :  { %v251_v62 = vpop.permute.xlu1 %250  ;;  %v255_v63 = vpop.permute.xlu0 %254 }
  0x84   :  { %v262_v0 = vmul.f32 %v260_v61, %v255_v63  ;;  %v261_v15 = vmul.f32 %v260_v61, %v251_v62 }
  0x86   :  { %v268_v10 = vadd.f32 %v266_v6, %v262_v0  ;;  %v267_v24 = vadd.f32 %v266_v6, %v261_v15 }
  0x88   :  { %v277_v12 = vpop.permute.xlu1 %276  ;;  %v273_v13 = vpop.permute.xlu0 %272  ;;  %v270_v20 = vmul.f32 %v268_v10, %v248_v9  ;;  %v269_v32 = vmul.f32 %v267_v24, %v247_v27 }
  0x89   :  { %v284_v14 = vmul.f32 %v282_v2, %v277_v12  ;;  %v283_v21 = vmul.f32 %v282_v2, %v273_v13 }
  0x8b   :  { %v290_v22 = vadd.f32 %v288_v11, %v284_v14  ;;  %v289_v28 = vadd.f32 %v288_v11, %v283_v21 }
  0x8d   :  { %v299_v23 = vpop.permute.xlu1 %298  ;;  %v292_v29 = vmul.f32 %v290_v22, %v270_v20  ;;  %v291_v35 = vmul.f32 %v289_v28, %v269_v32 }
  0x8e   :  { %v306_v25 = vmul.f32 %v304_v16, %v299_v23 }
  0x90   :  { %v312_v30 = vadd.f32 %v310_v17, %v306_v25 }
  0x91   :  { %v295_v31 = vpop.permute.xlu1 %294 }
  0x92   :  { %v1069_v33 = vmul.f32 %v312_v30, %v292_v29  ;;  %v305_v34 = vmul.f32 %v304_v16, %v295_v31 }
  0x94   :  { %v353_v36 = vand.u32 4294901760, %v1069_v33  ;;  %v311_v37 = vadd.f32 %v310_v17, %v305_v34 }
  0x96   :  { %v1072_v39 = vmul.f32 %v311_v37, %v291_v35  ;;  %882 = vmatprep.subr.mxu0 %v353_v36  ;;  %v441_v40 = vsub.f32 %v1069_v33, %v353_v36 }
  0x97   :  { %883 = vmatpush3.msra.mxu0 %v353_v36 }
  0x98   :  { %v356_v5 = vand.u32 4294901760, %v1072_v39  ;;  %v442_v42 = vand.u32 4294901760, %v441_v40 }
  0x9a   :  { %884 = vmatprep.subr.mxu0 %v356_v5  ;;  %v443_v43 = vsub.f32 %v441_v40, %v442_v42  ;;  %v448_v45 = vsub.f32 %v1072_v39, %v356_v5 }
  0x9b   :  { %885 = vmatpush3.msra.mxu0 %v356_v5 }
  0x9c   :  { %896 = vmatprep.subr.mxu0 %v441_v40  ;;  %887 = vmatmul.mubr.f32.vlgmr.msra.gmra.mxu0 %v405_v41  ;;  %v444_v46 = vand.u32 4294901760, %v443_v43  ;;  %v449_v47 = vand.u32 4294901760, %v448_v45 }
  0x9d   :  { %897 = vmatpush3.msra.mxu0 %v441_v40  ;;  %900 = vmatprep.mubr.f32.mxu0 %v1034_v52 }
  0x9e   :  { %889 = vmatprep.subr.mxu1 %v444_v46  ;;  %898 = vmatprep.subr.mxu0 %v448_v45  ;;  %v450_v48 = vsub.f32 %v448_v45, %v449_v47 }
  0x9f   :  { %890 = vmatpush3.msra.mxu1 %v444_v46  ;;  %899 = vmatpush3.msra.mxu0 %v448_v45 }
  0xa0   :  { %910 = vmatprep.subr.mxu0 %v442_v42  ;;  %901 = vmatmul.mubr.f32.vlgmr.msra.gmra.mxu0 %v402_v18  ;;  %v451_v49 = vand.u32 4294901760, %v450_v48 }
  0xa1   :  { %911 = vmatpush3.msra.mxu0 %v442_v42  ;;  %914 = vmatprep.mubr.f32.mxu0 %v1025_v44 }
  0xa2   :  { %891 = vmatprep.subr.mxu1 %v451_v49  ;;  %912 = vmatprep.subr.mxu0 %v449_v47 }
  0xa3   :  { %892 = vmatpush3.msra.mxu1 %v451_v49  ;;  %913 = vmatpush3.msra.mxu0 %v449_v47 }
  0xa4   :  { %894 = vmatmul.mubr.f32.vlgmr.msra.gmra.mxu1 %v1066_v8  ;;  %903 = vmatprep.subr.mxu1 %v353_v36 }
  0xa5   :  { %904 = vmatpush3.msra.mxu1 %v353_v36  ;;  %907 = vmatprep.mubr.f32.mxu1 %v393_v58 }
  0xa6   :  { %905 = vmatprep.subr.mxu1 %v356_v5  ;;  %915 = vmatmul.mubr.f32.vlgmr.msra.gmra.mxu0 %v1066_v8 }
  0xa7   :  { %906 = vmatpush3.msra.mxu1 %v356_v5 }
  0xa8   :  { %908 = vmatmul.mubr.f32.vlgmr.msra.gmra.mxu1 %v403_v26  ;;  %917 = vmatprep.subr.mxu1 %v353_v36 }
  0xa9   :  { %918 = vmatpush3.msra.mxu1 %v353_v36  ;;  %921 = vmatprep.mubr.f32.mxu1 %v1025_v44 }
  0xaa   :  { %919 = vmatprep.subr.mxu1 %v356_v5 }
  0xab   :  { %920 = vmatpush3.msra.mxu1 %v356_v5 }
  0xac   :  { %922 = vmatmul.mubr.f32.vlgmr.msra.gmra.mxu1 %v1066_v8 }
 0x15c   :  { %v888_v50 = vpop.f32.mrf.mxu0 }
 0x15e   :  { %v397_v51 = vpop.f32.mrf.mxu0 }
 0x160   :  { %v902_v53 = vpop.f32.mrf.mxu0 }
 0x162   :  { %v570_v55 = vpop.f32.mrf.mxu0 }
 0x164   :  { %v895_v54 = vpop.f32.mrf.mxu1 }
 0x165   :  { %v495_v52 = vadd.f32 %v895_v54, %v888_v50 }
 0x166   :  { %v488_v58 = vpop.f32.mrf.mxu1  ;;  %v916_v60 = vpop.f32.mrf.mxu0 }
 0x167   :  { %v578_v56 = vadd.f32 %v902_v53, %v495_v52  ;;  %v489_v57 = vadd.f32 %v488_v58, %v397_v51 }
 0x168   :  { %v909_v59 = vpop.f32.mrf.mxu1  ;;  %v737_v0 = vpop.f32.mrf.mxu0 }
 0x169   :  { %v571_v61 = vadd.f32 %v570_v55, %v489_v57  ;;  %v661_v62 = vadd.f32 %v909_v59, %v578_v56 }
 0x16a   :  { %v652_v63 = vpop.f32.mrf.mxu1 }
 0x16b   :  { %v744_v4 = vadd.f32 %v916_v60, %v661_v62  ;;  %v653_v44 = vadd.f32 %v652_v63, %v571_v61 }
 0x16c   :  { %v923_v1 = vpop.f32.mrf.mxu1 }
 0x16d   :  { %v738_v2 = vadd.f32 %v737_v0, %v653_v44  ;;  %v823_v3 = vadd.f32 %v923_v1, %v744_v4 }
 0x16e   :  { %v816_v6 = vpop.f32.mrf.mxu1 }
 0x16f   :  { %v817_v7 = vadd.f32 %v816_v6, %v738_v2  ;;  %v827_v8 = vmul.f32 %v823_v3, %v1069_v33 }
 0x171   :  { %v826_v9 = vmul.f32 %v817_v7, %v1072_v39 }
 0x173   :  { %v828_v10 = vadd.f32 %v827_v8, %v826_v9 }
 0x175   :  { %v829_v11 = vrot.slane %v828_v10, 4 }
 0x177   :  { %v830_v12 = vadd.f32 %v829_v11, %v828_v10 }
 0x179   :  { %v831_v13 = vrot.slane %v830_v12, 2 }
 0x17b   :  { %v832_v14 = vadd.f32 %v831_v13, %v830_v12 }
 0x17d   :  { %v833_v15 = vrot.slane %v832_v14, 1 }
 0x17f   :  { %v834_v16 = vadd.f32 %v833_v15, %v832_v14 }
 0x181   :  { %835 = vst [vmem:[#allocation2] sm:$0x1] %v834_v16 }
 0x182   :  { %962 = shalt.err (!%p959_p4)
}
 0x183   :  { %845 = dma.vmem_to_hbm [thread:$0]  %s843_s20, 16, %s1093_s3, [#allocation3]  }
 0x184   :  { %971 = dma.done.wait [#allocation3], 16  }
 0x185   :  { %972 = vsyncadd [#allocation3], 4294967280 }
 0x186   :  { %849 = vsyncpa [#allocation3], 1 }

</bundles_post_ra>
